<compile_context>
chip_gen: v5e
topology: v5e:2x2
jax: 0.10.0
libtpu: 0.0.40
codegen_flags: <defaults>
</compile_context>

<pallas_src>
import jax
import jax.numpy as jnp
from jax.experimental import pallas as pl
from jax.experimental.pallas import tpu as pltpu


# ------------------------------------------------------------------ fused kernel

def _fused_downsample_kernel(x_ref, w1_ref, kr_ref, kl_ref, wpr_ref, wpl_ref,
                             o_ref, carry_ref):
    """One grid step = (one image n, one tile of `tr` output rows).

    x_ref   : (1, tr, 2, Wo, 2C) pair-split NHWC view of the input:
              x_ref[0, p, a, j, b*C + c] = x[n, 2*(r*tr + p) + a, 2*j + b, c]
    w1_ref  : (C, C)    right-branch first 1x1 weights (y = x @ w1)
    kr_ref  : (3, 3, C) right-branch depthwise weights
    kl_ref  : (3, 3, C) left-branch depthwise weights
    wpr_ref : (C, 2C)   right final 1x1, channel_shuffle folded into even columns
    wpl_ref : (C, 2C)   left  final 1x1, channel_shuffle folded into odd  columns
    o_ref   : (1, tr, Wo, 2C) shuffled output rows for this tile
    carry_ref: VMEM (2, Wo, C) "one output row down" depthwise partial of this
              tile's last input-row pair, consumed by the next row tile
              (slot 0 = right branch, slot 1 = left branch).
    """
    r = pl.program_id(1)
    _, tr, _, Wo, C2 = x_ref.shape
    C = C2 // 2
    cdt = x_ref.dtype            # MXU/VPU operand dtype (f32 or bf16); acc stays f32

    # Output row 0 of the image has zero padding above it -> zero the carry.
    @pl.when(r == 0)
    def _():
        carry_ref[...] = jnp.zeros_like(carry_ref)

    # Parity split: a = even input rows, b = odd input rows; lane halves are
    # even / odd input columns (free host-side reshape produced this layout).
    a = x_ref[0, :, 0, :, :]                       # (tr, Wo, 2C)
    b = x_ref[0, :, 1, :, :]
    ae, ao = a[..., :C], a[..., C:]
    be, bo = b[..., :C], b[..., C:]

    # Right-branch first 1x1 conv + ReLU, fused (no HBM intermediate).
    w1 = w1_ref[...]

    def pw_relu(t):                                # (tr, Wo, C) -> (tr, Wo, C)
        y = jnp.dot(t.reshape(tr * Wo, C), w1,
                    preferred_element_type=jnp.float32)
        return jnp.maximum(y, 0.0).astype(cdt).reshape(tr, Wo, C)

    rae, rao, rbe, rbo = pw_relu(ae), pw_relu(ao), pw_relu(be), pw_relu(bo)

    # 3x3 depthwise stride-2 pad-1 via parity decomposition + shifted partials.
    def shift_col(t):        # contribution lands one output column to the right
        if Wo == 1:
            return jnp.zeros_like(t)
        return jnp.concatenate(
            [jnp.zeros((tr, 1, C), t.dtype), t[:, :Wo - 1, :]], axis=1)

    def dw_branch(pe, po, qe, qo, k_ref, slot):
        # pe/po: even input row (even/odd cols); qe/qo: odd input row.
        k = k_ref[...]                             # (3, 3, C)
        s0 = pe * k[1, 1] + po * k[1, 2] + qe * k[2, 1] + qo * k[2, 2]
        s1 = po * k[1, 0] + qo * k[2, 0]           # -> one output column right
        s2 = qe * k[0, 1] + qo * k[0, 2]           # -> one output row down
        s3 = qo * k[0, 0]                          # -> one row down + one col right
        rowdown = s2 + shift_col(s3)
        carry_in = carry_ref[slot]                 # from previous row tile (or 0)
        if tr > 1:
            down = jnp.concatenate([carry_in[None], rowdown[:tr - 1]], axis=0)
        else:
            down = carry_in[None]
        carry_ref[slot] = rowdown[tr - 1]          # for the next row tile
        return s0 + shift_col(s1) + down           # (tr, Wo, C)

    zr = dw_branch(rae, rao, rbe, rbo, kr_ref, 0)
    zl = dw_branch(ae, ao, be, bo, kl_ref, 1)

    # Both final 1x1 convs + ReLU + concat + channel_shuffle(groups=2): the column
    # permutation of wpr/wpl writes the shuffled output directly (one dense store).
    y = (jnp.dot(zr.reshape(tr * Wo, C), wpr_ref[...],
                 preferred_element_type=jnp.float32)
         + jnp.dot(zl.reshape(tr * Wo, C), wpl_ref[...],
                   preferred_element_type=jnp.float32))
    o_ref[0] = jnp.maximum(y, 0.0).reshape(tr, Wo, C2).astype(o_ref.dtype)


# ----------------------------------------------------------------- forward

def downsample_unit_forward(x_nchw, params, groups=2, io_dtype=None, row_tile=8):
    """Forward pass of DownsampleUnit.

    io_dtype: optional narrower storage/MXU-operand dtype (e.g. jnp.bfloat16 on
    v6e/v7x) -- matmul accumulation stays f32 inside the kernel.
    row_tile: target number of output rows per grid step (pipelining / VMEM bound).
    """
    assert groups == 2, "kernel folds channel_shuffle for groups=2"
    N, C, H, W = x_nchw.shape
    # TODO(synk): odd H/W (ceil(H/2) outputs) not supported by this kernel.
    assert H % 2 == 0 and W % 2 == 0
    Ho, Wo = H // 2, W // 2
    C2 = 2 * C
    dt = jnp.dtype(io_dtype) if io_dtype is not None else x_nchw.dtype

    # Largest divisor of Ho <= row_tile (avoids ragged blocks, which would break
    # the cross-tile carry under Pallas block-revisit semantics).
    tr = max(d for d in range(1, min(row_tile, Ho) + 1) if Ho % d == 0)
    grid = (N, Ho // tr)

    # ---- trace-time weight prep (tiny; cast once on the host) ----
    w1 = params["w1r"].astype(dt)                         # (C, C)
    kr = params["w2r"].astype(dt)                         # (3, 3, C)
    kl = params["w1l"].astype(dt)                         # (3, 3, C)
    # concat + channel_shuffle(groups=2) folded into the output columns:
    #   out[..., 2c]   = right branch column c (w3r)
    #   out[..., 2c+1] = left  branch column c (w2l)
    wpr = jnp.zeros((C, C2), dt).at[:, 0::2].set(params["w3r"].astype(dt))
    wpl = jnp.zeros((C, C2), dt).at[:, 1::2].set(params["w2l"].astype(dt))

    # ---- NCHW -> NHWC boundary transpose (interface requirement), then a FREE
    # metadata reshape into the row/column pair-split view consumed by the kernel.
    x = jnp.transpose(x_nchw, (0, 2, 3, 1)).astype(dt)    # (N, H, W, C)
    x5 = x.reshape(N, Ho, 2, Wo, C2)                      # lanes: [even col C | odd col C]

    out = pl.pallas_call(
        _fused_downsample_kernel,
        out_shape=jax.ShapeDtypeStruct((N, Ho, Wo, C2), dt),
        grid=grid,
        in_specs=[
            pl.BlockSpec((1, tr, 2, Wo, C2), lambda n, r: (n, r, 0, 0, 0)),
            pl.BlockSpec((C, C), lambda n, r: (0, 0)),
            pl.BlockSpec((3, 3, C), lambda n, r: (0, 0, 0)),
            pl.BlockSpec((3, 3, C), lambda n, r: (0, 0, 0)),
            pl.BlockSpec((C, C2), lambda n, r: (0, 0)),
            pl.BlockSpec((C, C2), lambda n, r: (0, 0)),
        ],
        out_specs=pl.BlockSpec((1, tr, Wo, C2), lambda n, r: (n, r, 0, 0)),
        scratch_shapes=[pltpu.VMEM((2, Wo, C), dt)],
        compiler_params=pltpu.CompilerParams(
            # Batch axis shards across TensorCores; the row axis carries the
            # one-row-down depthwise partial in scratch -> must stay "arbitrary".
            dimension_semantics=("parallel", "arbitrary")),
    )(x5, w1, kr, kl, wpr, wpl)                           # (N, Ho, Wo, 2C)

    # ---- NHWC -> NCHW boundary transpose back ----
    return jnp.transpose(out, (0, 3, 1, 2)).astype(x_nchw.dtype)


# -------------------------------------------------------- plain-JAX reference

def ref_forward(x, params, groups=2):
    C = x.shape[1]

    def conv1x1(y, wmat):  # wmat: (Cin, Cout)
        w = jnp.transpose(wmat)[:, :, None, None]                  # OIHW
        return jax.lax.conv_general_dilated(
            y, w, (1, 1), "VALID", dimension_numbers=("NCHW", "OIHW", "NCHW"))

    def dwconv(y, wdw):    # wdw: (3, 3, C)
        w = jnp.transpose(wdw, (2, 0, 1))[:, None, :, :]           # (C,1,3,3)
        return jax.lax.conv_general_dilated(
            y, w, (2, 2), ((1, 1), (1, 1)),
            dimension_numbers=("NCHW", "OIHW", "NCHW"), feature_group_count=C)

    relu = lambda t: jnp.maximum(t, 0.0)
    r = relu(conv1x1(x, params["w1r"]))
    r = dwconv(r, params["w2r"])
    r = relu(conv1x1(r, params["w3r"]))
    l = dwconv(x, params["w1l"])
    l = relu(conv1x1(l, params["w2l"]))
    out = jnp.concatenate([r, l], axis=1)
    B, TC, Hh, Ww = out.shape
    out = out.reshape(B, groups, TC // groups, Hh, Ww)
    return jnp.transpose(out, (0, 2, 1, 3, 4)).reshape(B, TC, Hh, Ww)


# --------------------------------------------------------------------- main

if __name__ == "__main__":
    key = jax.random.PRNGKey(0)
    inplanes, N, H, W = 8, 2, 16, 16
    ks = jax.random.split(key, 6)
    # synthetic deterministic weights (BN layers are unused in forward -> omitted)
    params = {
        "w1r": 0.2 * jax.random.normal(ks[0], (inplanes, inplanes), jnp.float32),
        "w2r": 0.2 * jax.random.normal(ks[1], (3, 3, inplanes), jnp.float32),
        "w3r": 0.2 * jax.random.normal(ks[2], (inplanes, inplanes), jnp.float32),
        "w1l": 0.2 * jax.random.normal(ks[3], (3, 3, inplanes), jnp.float32),
        "w2l": 0.2 * jax.random.normal(ks[4], (inplanes, inplanes), jnp.float32),
    }
    x = jax.random.normal(ks[5], (N, inplanes, H, W), jnp.float32)   # NCHW like torch

    ref = ref_forward(x, params, groups=2)

    # f32, two row tiles per image (Ho=8, tr=4) -- exercises the cross-tile carry.
    out = jax.block_until_ready(downsample_unit_forward(x, params, row_tile=4))
    assert out.shape == (N, 2 * inplanes, H // 2, W // 2), out.shape
    err = float(jnp.max(jnp.abs(out - ref)))
    assert err < 1e-3, f"f32 (tr=4) max abs error {err}"

    # f32, single row tile per image (tr = Ho).
    out2 = jax.block_until_ready(downsample_unit_forward(x, params, row_tile=8))
    err2 = float(jnp.max(jnp.abs(out2 - ref)))
    assert err2 < 1e-3, f"f32 (tr=8) max abs error {err2}"

    # bf16 I/O + bf16 MXU operands (f32 accumulation) -- loose-tolerance smoke test.
    out3 = jax.block_until_ready(
        downsample_unit_forward(x, params, io_dtype=jnp.bfloat16, row_tile=4))
    assert out3.shape == ref.shape
    assert bool(jnp.all(jnp.isfinite(out3)))
    err3 = float(jnp.max(jnp.abs(out3 - ref)))
    assert err3 < 0.25, f"bf16 max abs error {err3}"

    print("KERNEL_OK")
</pallas_src>

<mosaic_0001>
module attributes {stable_mosaic.version = 11 : i64} {
  func.func @_fused_downsample_kernel(%arg0: i32, %arg1: i32, %arg2: memref<1x4x2x8x16xf32, #tpu.memory_space<vmem>>, %arg3: memref<8x8xf32, #tpu.memory_space<vmem>>, %arg4: memref<3x3x8xf32, #tpu.memory_space<vmem>>, %arg5: memref<3x3x8xf32, #tpu.memory_space<vmem>>, %arg6: memref<8x16xf32, #tpu.memory_space<vmem>>, %arg7: memref<8x16xf32, #tpu.memory_space<vmem>>, %arg8: memref<1x4x8x16xf32, #tpu.memory_space<vmem>>, %arg9: memref<2x8x8xf32, #tpu.memory_space<vmem>>) attributes {dimension_semantics = [#tpu.dimension_semantics<parallel>, #tpu.dimension_semantics<arbitrary>], iteration_bounds = array<i64: 2, 2>, scalar_prefetch = 0 : i64, scratch_operands = 1 : i64, tpu.core_type = #tpu.core_type<tc>, window_params = [{transform_indices = @transform_0, window_bounds = array<i64: 1, 4, 2, 8, 16>}, {pipeline_mode = #tpu.pipeline_mode<synchronous>, transform_indices = @transform_1, window_bounds = array<i64: 8, 8>}, {pipeline_mode = #tpu.pipeline_mode<synchronous>, transform_indices = @transform_2, window_bounds = array<i64: 3, 3, 8>}, {pipeline_mode = #tpu.pipeline_mode<synchronous>, transform_indices = @transform_3, window_bounds = array<i64: 3, 3, 8>}, {pipeline_mode = #tpu.pipeline_mode<synchronous>, transform_indices = @transform_4, window_bounds = array<i64: 8, 16>}, {pipeline_mode = #tpu.pipeline_mode<synchronous>, transform_indices = @transform_5, window_bounds = array<i64: 8, 16>}, {transform_indices = @transform_6, window_bounds = array<i64: 1, 4, 8, 16>}]} {
    %c0_i32 = arith.constant 0 : i32
    %0 = arith.cmpi eq, %arg1, %c0_i32 : i32
    %1 = arith.extui %0 : i1 to i32
    %c0_i32_0 = arith.constant 0 : i32
    %2 = arith.cmpi ne, %1, %c0_i32_0 : i32
    scf.if %2 {
      %cst_51 = arith.constant 0.000000e+00 : f32
      %185 = vector.broadcast %cst_51 : f32 to vector<2x8x8xf32>
      %c0_52 = arith.constant 0 : index
      %c0_53 = arith.constant 0 : index
      %c0_54 = arith.constant 0 : index
      %186 = vector.load %arg9[%c0_52, %c0_53, %c0_54] : memref<2x8x8xf32, #tpu.memory_space<vmem>>, vector<2x8x8xf32>
      tpu.vector_store %arg9[%c0_52, %c0_53, %c0_54], %185 {strides = array<i32>} : memref<2x8x8xf32, #tpu.memory_space<vmem>>, vector<2x8x8xf32>,
    } else {
    }
    %c0 = arith.constant 0 : index
    %c0_1 = arith.constant 0 : index
    %c0_2 = arith.constant 0 : index
    %c0_3 = arith.constant 0 : index
    %c0_4 = arith.constant 0 : index
    %3 = vector.load %arg2[%c0, %c0_1, %c0_2, %c0_3, %c0_4] : memref<1x4x2x8x16xf32, #tpu.memory_space<vmem>>, vector<1x4x1x8x16xf32>
    %4 = vector.shape_cast %3 : vector<1x4x1x8x16xf32> to vector<4x8x16xf32>
    %c0_5 = arith.constant 0 : index
    %c0_6 = arith.constant 0 : index
    %c1 = arith.constant 1 : index
    %c0_7 = arith.constant 0 : index
    %c0_8 = arith.constant 0 : index
    %5 = vector.load %arg2[%c0_5, %c0_6, %c1, %c0_7, %c0_8] : memref<1x4x2x8x16xf32, #tpu.memory_space<vmem>>, vector<1x4x1x8x16xf32>
    %6 = vector.shape_cast %5 : vector<1x4x1x8x16xf32> to vector<4x8x16xf32>
    %7 = vector.extract_strided_slice %4 {offsets = [0, 0, 0], sizes = [4, 8, 8], strides = [1, 1, 1]} : vector<4x8x16xf32> to vector<4x8x8xf32>
    %8 = vector.extract_strided_slice %4 {offsets = [0, 0, 8], sizes = [4, 8, 8], strides = [1, 1, 1]} : vector<4x8x16xf32> to vector<4x8x8xf32>
    %9 = vector.extract_strided_slice %6 {offsets = [0, 0, 0], sizes = [4, 8, 8], strides = [1, 1, 1]} : vector<4x8x16xf32> to vector<4x8x8xf32>
    %10 = vector.extract_strided_slice %6 {offsets = [0, 0, 8], sizes = [4, 8, 8], strides = [1, 1, 1]} : vector<4x8x16xf32> to vector<4x8x8xf32>
    %c0_9 = arith.constant 0 : index
    %c0_10 = arith.constant 0 : index
    %11 = vector.load %arg3[%c0_9, %c0_10] : memref<8x8xf32, #tpu.memory_space<vmem>>, vector<8x8xf32>
    %12 = vector.shape_cast %7 : vector<4x8x8xf32> to vector<32x8xf32>
    %cst = arith.constant dense<0.000000e+00> : vector<32x8xf32>
    %13 = tpu.matmul %12, %11, %cst {dimension_numbers = #tpu.dot_dimension_numbers<[1], [0], [0], [1], [0, 0, 1, 1], [], []>} : vector<32x8xf32>, vector<8x8xf32>, vector<32x8xf32> -> vector<32x8xf32>
    %cst_11 = arith.constant 0.000000e+00 : f32
    %14 = vector.broadcast %cst_11 : f32 to vector<32x8xf32>
    %15 = arith.maximumf %13, %14 : vector<32x8xf32>
    %16 = vector.shape_cast %15 : vector<32x8xf32> to vector<4x8x8xf32>
    %17 = vector.shape_cast %8 : vector<4x8x8xf32> to vector<32x8xf32>
    %cst_12 = arith.constant dense<0.000000e+00> : vector<32x8xf32>
    %18 = tpu.matmul %17, %11, %cst_12 {dimension_numbers = #tpu.dot_dimension_numbers<[1], [0], [0], [1], [0, 0, 1, 1], [], []>} : vector<32x8xf32>, vector<8x8xf32>, vector<32x8xf32> -> vector<32x8xf32>
    %cst_13 = arith.constant 0.000000e+00 : f32
    %19 = vector.broadcast %cst_13 : f32 to vector<32x8xf32>
    %20 = arith.maximumf %18, %19 : vector<32x8xf32>
    %21 = vector.shape_cast %20 : vector<32x8xf32> to vector<4x8x8xf32>
    %22 = vector.shape_cast %9 : vector<4x8x8xf32> to vector<32x8xf32>
    %cst_14 = arith.constant dense<0.000000e+00> : vector<32x8xf32>
    %23 = tpu.matmul %22, %11, %cst_14 {dimension_numbers = #tpu.dot_dimension_numbers<[1], [0], [0], [1], [0, 0, 1, 1], [], []>} : vector<32x8xf32>, vector<8x8xf32>, vector<32x8xf32> -> vector<32x8xf32>
    %cst_15 = arith.constant 0.000000e+00 : f32
    %24 = vector.broadcast %cst_15 : f32 to vector<32x8xf32>
    %25 = arith.maximumf %23, %24 : vector<32x8xf32>
    %26 = vector.shape_cast %25 : vector<32x8xf32> to vector<4x8x8xf32>
    %27 = vector.shape_cast %10 : vector<4x8x8xf32> to vector<32x8xf32>
    %cst_16 = arith.constant dense<0.000000e+00> : vector<32x8xf32>
    %28 = tpu.matmul %27, %11, %cst_16 {dimension_numbers = #tpu.dot_dimension_numbers<[1], [0], [0], [1], [0, 0, 1, 1], [], []>} : vector<32x8xf32>, vector<8x8xf32>, vector<32x8xf32> -> vector<32x8xf32>
    %cst_17 = arith.constant 0.000000e+00 : f32
    %29 = vector.broadcast %cst_17 : f32 to vector<32x8xf32>
    %30 = arith.maximumf %28, %29 : vector<32x8xf32>
    %31 = vector.shape_cast %30 : vector<32x8xf32> to vector<4x8x8xf32>
    %c0_18 = arith.constant 0 : index
    %c0_19 = arith.constant 0 : index
    %c0_20 = arith.constant 0 : index
    %32 = vector.load %arg4[%c0_18, %c0_19, %c0_20] : memref<3x3x8xf32, #tpu.memory_space<vmem>>, vector<3x3x8xf32>
    %33 = vector.extract_strided_slice %32 {offsets = [1, 1, 0], sizes = [1, 1, 8], strides = [1, 1, 1]} : vector<3x3x8xf32> to vector<1x1x8xf32>
    %34 = vector.shape_cast %33 : vector<1x1x8xf32> to vector<8xf32>
    %35 = vector.shape_cast %34 : vector<8xf32> to vector<1x1x8xf32>
    %36 = vector.broadcast %35 : vector<1x1x8xf32> to vector<4x8x8xf32>
    %37 = arith.mulf %16, %36 : vector<4x8x8xf32>
    %38 = vector.extract_strided_slice %32 {offsets = [1, 2, 0], sizes = [1, 1, 8], strides = [1, 1, 1]} : vector<3x3x8xf32> to vector<1x1x8xf32>
    %39 = vector.shape_cast %38 : vector<1x1x8xf32> to vector<8xf32>
    %40 = vector.shape_cast %39 : vector<8xf32> to vector<1x1x8xf32>
    %41 = vector.broadcast %40 : vector<1x1x8xf32> to vector<4x8x8xf32>
    %42 = arith.mulf %21, %41 : vector<4x8x8xf32>
    %43 = arith.addf %37, %42 : vector<4x8x8xf32>
    %44 = vector.extract_strided_slice %32 {offsets = [2, 1, 0], sizes = [1, 1, 8], strides = [1, 1, 1]} : vector<3x3x8xf32> to vector<1x1x8xf32>
    %45 = vector.shape_cast %44 : vector<1x1x8xf32> to vector<8xf32>
    %46 = vector.shape_cast %45 : vector<8xf32> to vector<1x1x8xf32>
    %47 = vector.broadcast %46 : vector<1x1x8xf32> to vector<4x8x8xf32>
    %48 = arith.mulf %26, %47 : vector<4x8x8xf32>
    %49 = arith.addf %43, %48 : vector<4x8x8xf32>
    %50 = vector.extract_strided_slice %32 {offsets = [2, 2, 0], sizes = [1, 1, 8], strides = [1, 1, 1]} : vector<3x3x8xf32> to vector<1x1x8xf32>
    %51 = vector.shape_cast %50 : vector<1x1x8xf32> to vector<8xf32>
    %52 = vector.shape_cast %51 : vector<8xf32> to vector<1x1x8xf32>
    %53 = vector.broadcast %52 : vector<1x1x8xf32> to vector<4x8x8xf32>
    %54 = arith.mulf %31, %53 : vector<4x8x8xf32>
    %55 = arith.addf %49, %54 : vector<4x8x8xf32>
    %56 = vector.extract_strided_slice %32 {offsets = [1, 0, 0], sizes = [1, 1, 8], strides = [1, 1, 1]} : vector<3x3x8xf32> to vector<1x1x8xf32>
    %57 = vector.shape_cast %56 : vector<1x1x8xf32> to vector<8xf32>
    %58 = vector.shape_cast %57 : vector<8xf32> to vector<1x1x8xf32>
    %59 = vector.broadcast %58 : vector<1x1x8xf32> to vector<4x8x8xf32>
    %60 = arith.mulf %21, %59 : vector<4x8x8xf32>
    %61 = vector.extract_strided_slice %32 {offsets = [2, 0, 0], sizes = [1, 1, 8], strides = [1, 1, 1]} : vector<3x3x8xf32> to vector<1x1x8xf32>
    %62 = vector.shape_cast %61 : vector<1x1x8xf32> to vector<8xf32>
    %63 = vector.shape_cast %62 : vector<8xf32> to vector<1x1x8xf32>
    %64 = vector.broadcast %63 : vector<1x1x8xf32> to vector<4x8x8xf32>
    %65 = arith.mulf %31, %64 : vector<4x8x8xf32>
    %66 = arith.addf %60, %65 : vector<4x8x8xf32>
    %67 = vector.extract_strided_slice %32 {offsets = [0, 1, 0], sizes = [1, 1, 8], strides = [1, 1, 1]} : vector<3x3x8xf32> to vector<1x1x8xf32>
    %68 = vector.shape_cast %67 : vector<1x1x8xf32> to vector<8xf32>
    %69 = vector.shape_cast %68 : vector<8xf32> to vector<1x1x8xf32>
    %70 = vector.broadcast %69 : vector<1x1x8xf32> to vector<4x8x8xf32>
    %71 = arith.mulf %26, %70 : vector<4x8x8xf32>
    %72 = vector.extract_strided_slice %32 {offsets = [0, 2, 0], sizes = [1, 1, 8], strides = [1, 1, 1]} : vector<3x3x8xf32> to vector<1x1x8xf32>
    %73 = vector.shape_cast %72 : vector<1x1x8xf32> to vector<8xf32>
    %74 = vector.shape_cast %73 : vector<8xf32> to vector<1x1x8xf32>
    %75 = vector.broadcast %74 : vector<1x1x8xf32> to vector<4x8x8xf32>
    %76 = arith.mulf %31, %75 : vector<4x8x8xf32>
    %77 = arith.addf %71, %76 : vector<4x8x8xf32>
    %78 = vector.extract_strided_slice %32 {offsets = [0, 0, 0], sizes = [1, 1, 8], strides = [1, 1, 1]} : vector<3x3x8xf32> to vector<1x1x8xf32>
    %79 = vector.shape_cast %78 : vector<1x1x8xf32> to vector<8xf32>
    %80 = vector.shape_cast %79 : vector<8xf32> to vector<1x1x8xf32>
    %81 = vector.broadcast %80 : vector<1x1x8xf32> to vector<4x8x8xf32>
    %82 = arith.mulf %31, %81 : vector<4x8x8xf32>
    %cst_21 = arith.constant 0.000000e+00 : f32
    %83 = vector.broadcast %cst_21 : f32 to vector<4x1x8xf32>
    %84 = vector.extract_strided_slice %82 {offsets = [0, 0, 0], sizes = [4, 7, 8], strides = [1, 1, 1]} : vector<4x8x8xf32> to vector<4x7x8xf32>
    %85 = tpu.concatenate %83, %84 in 1 : vector<4x1x8xf32>, vector<4x7x8xf32> -> vector<4x8x8xf32>
    %86 = arith.addf %77, %85 : vector<4x8x8xf32>
    %c0_22 = arith.constant 0 : index
    %c0_23 = arith.constant 0 : index
    %c0_24 = arith.constant 0 : index
    %87 = vector.load %arg9[%c0_22, %c0_23, %c0_24] : memref<2x8x8xf32, #tpu.memory_space<vmem>>, vector<1x8x8xf32>
    %88 = vector.shape_cast %87 : vector<1x8x8xf32> to vector<8x8xf32>
    %89 = vector.shape_cast %88 : vector<8x8xf32> to vector<1x8x8xf32>
    %90 = vector.extract_strided_slice %86 {offsets = [0, 0, 0], sizes = [3, 8, 8], strides = [1, 1, 1]} : vector<4x8x8xf32> to vector<3x8x8xf32>
    %91 = tpu.concatenate %89, %90 in 0 : vector<1x8x8xf32>, vector<3x8x8xf32> -> vector<4x8x8xf32>
    %92 = vector.extract_strided_slice %86 {offsets = [3, 0, 0], sizes = [1, 8, 8], strides = [1, 1, 1]} : vector<4x8x8xf32> to vector<1x8x8xf32>
    %93 = vector.shape_cast %92 : vector<1x8x8xf32> to vector<8x8xf32>
    %c0_25 = arith.constant 0 : index
    %c0_26 = arith.constant 0 : index
    %c0_27 = arith.constant 0 : index
    %94 = vector.load %arg9[%c0_25, %c0_26, %c0_27] : memref<2x8x8xf32, #tpu.memory_space<vmem>>, vector<1x8x8xf32>
    %95 = vector.shape_cast %94 : vector<1x8x8xf32> to vector<8x8xf32>
    %96 = vector.shape_cast %93 : vector<8x8xf32> to vector<1x8x8xf32>
    tpu.vector_store %arg9[%c0_25, %c0_26, %c0_27], %96 {strides = array<i32>} : memref<2x8x8xf32, #tpu.memory_space<vmem>>, vector<1x8x8xf32>,
    %cst_28 = arith.constant 0.000000e+00 : f32
    %97 = vector.broadcast %cst_28 : f32 to vector<4x1x8xf32>
    %98 = vector.extract_strided_slice %66 {offsets = [0, 0, 0], sizes = [4, 7, 8], strides = [1, 1, 1]} : vector<4x8x8xf32> to vector<4x7x8xf32>
    %99 = tpu.concatenate %97, %98 in 1 : vector<4x1x8xf32>, vector<4x7x8xf32> -> vector<4x8x8xf32>
    %100 = arith.addf %55, %99 : vector<4x8x8xf32>
    %101 = arith.addf %100, %91 : vector<4x8x8xf32>
    %c0_29 = arith.constant 0 : index
    %c0_30 = arith.constant 0 : index
    %c0_31 = arith.constant 0 : index
    %102 = vector.load %arg5[%c0_29, %c0_30, %c0_31] : memref<3x3x8xf32, #tpu.memory_space<vmem>>, vector<3x3x8xf32>
    %103 = vector.extract_strided_slice %102 {offsets = [1, 1, 0], sizes = [1, 1, 8], strides = [1, 1, 1]} : vector<3x3x8xf32> to vector<1x1x8xf32>
    %104 = vector.shape_cast %103 : vector<1x1x8xf32> to vector<8xf32>
    %105 = vector.shape_cast %104 : vector<8xf32> to vector<1x1x8xf32>
    %106 = vector.broadcast %105 : vector<1x1x8xf32> to vector<4x8x8xf32>
    %107 = arith.mulf %7, %106 : vector<4x8x8xf32>
    %108 = vector.extract_strided_slice %102 {offsets = [1, 2, 0], sizes = [1, 1, 8], strides = [1, 1, 1]} : vector<3x3x8xf32> to vector<1x1x8xf32>
    %109 = vector.shape_cast %108 : vector<1x1x8xf32> to vector<8xf32>
    %110 = vector.shape_cast %109 : vector<8xf32> to vector<1x1x8xf32>
    %111 = vector.broadcast %110 : vector<1x1x8xf32> to vector<4x8x8xf32>
    %112 = arith.mulf %8, %111 : vector<4x8x8xf32>
    %113 = arith.addf %107, %112 : vector<4x8x8xf32>
    %114 = vector.extract_strided_slice %102 {offsets = [2, 1, 0], sizes = [1, 1, 8], strides = [1, 1, 1]} : vector<3x3x8xf32> to vector<1x1x8xf32>
    %115 = vector.shape_cast %114 : vector<1x1x8xf32> to vector<8xf32>
    %116 = vector.shape_cast %115 : vector<8xf32> to vector<1x1x8xf32>
    %117 = vector.broadcast %116 : vector<1x1x8xf32> to vector<4x8x8xf32>
    %118 = arith.mulf %9, %117 : vector<4x8x8xf32>
    %119 = arith.addf %113, %118 : vector<4x8x8xf32>
    %120 = vector.extract_strided_slice %102 {offsets = [2, 2, 0], sizes = [1, 1, 8], strides = [1, 1, 1]} : vector<3x3x8xf32> to vector<1x1x8xf32>
    %121 = vector.shape_cast %120 : vector<1x1x8xf32> to vector<8xf32>
    %122 = vector.shape_cast %121 : vector<8xf32> to vector<1x1x8xf32>
    %123 = vector.broadcast %122 : vector<1x1x8xf32> to vector<4x8x8xf32>
    %124 = arith.mulf %10, %123 : vector<4x8x8xf32>
    %125 = arith.addf %119, %124 : vector<4x8x8xf32>
    %126 = vector.extract_strided_slice %102 {offsets = [1, 0, 0], sizes = [1, 1, 8], strides = [1, 1, 1]} : vector<3x3x8xf32> to vector<1x1x8xf32>
    %127 = vector.shape_cast %126 : vector<1x1x8xf32> to vector<8xf32>
    %128 = vector.shape_cast %127 : vector<8xf32> to vector<1x1x8xf32>
    %129 = vector.broadcast %128 : vector<1x1x8xf32> to vector<4x8x8xf32>
    %130 = arith.mulf %8, %129 : vector<4x8x8xf32>
    %131 = vector.extract_strided_slice %102 {offsets = [2, 0, 0], sizes = [1, 1, 8], strides = [1, 1, 1]} : vector<3x3x8xf32> to vector<1x1x8xf32>
    %132 = vector.shape_cast %131 : vector<1x1x8xf32> to vector<8xf32>
    %133 = vector.shape_cast %132 : vector<8xf32> to vector<1x1x8xf32>
    %134 = vector.broadcast %133 : vector<1x1x8xf32> to vector<4x8x8xf32>
    %135 = arith.mulf %10, %134 : vector<4x8x8xf32>
    %136 = arith.addf %130, %135 : vector<4x8x8xf32>
    %137 = vector.extract_strided_slice %102 {offsets = [0, 1, 0], sizes = [1, 1, 8], strides = [1, 1, 1]} : vector<3x3x8xf32> to vector<1x1x8xf32>
    %138 = vector.shape_cast %137 : vector<1x1x8xf32> to vector<8xf32>
    %139 = vector.shape_cast %138 : vector<8xf32> to vector<1x1x8xf32>
    %140 = vector.broadcast %139 : vector<1x1x8xf32> to vector<4x8x8xf32>
    %141 = arith.mulf %9, %140 : vector<4x8x8xf32>
    %142 = vector.extract_strided_slice %102 {offsets = [0, 2, 0], sizes = [1, 1, 8], strides = [1, 1, 1]} : vector<3x3x8xf32> to vector<1x1x8xf32>
    %143 = vector.shape_cast %142 : vector<1x1x8xf32> to vector<8xf32>
    %144 = vector.shape_cast %143 : vector<8xf32> to vector<1x1x8xf32>
    %145 = vector.broadcast %144 : vector<1x1x8xf32> to vector<4x8x8xf32>
    %146 = arith.mulf %10, %145 : vector<4x8x8xf32>
    %147 = arith.addf %141, %146 : vector<4x8x8xf32>
    %148 = vector.extract_strided_slice %102 {offsets = [0, 0, 0], sizes = [1, 1, 8], strides = [1, 1, 1]} : vector<3x3x8xf32> to vector<1x1x8xf32>
    %149 = vector.shape_cast %148 : vector<1x1x8xf32> to vector<8xf32>
    %150 = vector.shape_cast %149 : vector<8xf32> to vector<1x1x8xf32>
    %151 = vector.broadcast %150 : vector<1x1x8xf32> to vector<4x8x8xf32>
    %152 = arith.mulf %10, %151 : vector<4x8x8xf32>
    %cst_32 = arith.constant 0.000000e+00 : f32
    %153 = vector.broadcast %cst_32 : f32 to vector<4x1x8xf32>
    %154 = vector.extract_strided_slice %152 {offsets = [0, 0, 0], sizes = [4, 7, 8], strides = [1, 1, 1]} : vector<4x8x8xf32> to vector<4x7x8xf32>
    %155 = tpu.concatenate %153, %154 in 1 : vector<4x1x8xf32>, vector<4x7x8xf32> -> vector<4x8x8xf32>
    %156 = arith.addf %147, %155 : vector<4x8x8xf32>
    %c1_33 = arith.constant 1 : index
    %c0_34 = arith.constant 0 : index
    %c0_35 = arith.constant 0 : index
    %157 = vector.load %arg9[%c1_33, %c0_34, %c0_35] : memref<2x8x8xf32, #tpu.memory_space<vmem>>, vector<1x8x8xf32>
    %158 = vector.shape_cast %157 : vector<1x8x8xf32> to vector<8x8xf32>
    %159 = vector.shape_cast %158 : vector<8x8xf32> to vector<1x8x8xf32>
    %160 = vector.extract_strided_slice %156 {offsets = [0, 0, 0], sizes = [3, 8, 8], strides = [1, 1, 1]} : vector<4x8x8xf32> to vector<3x8x8xf32>
    %161 = tpu.concatenate %159, %160 in 0 : vector<1x8x8xf32>, vector<3x8x8xf32> -> vector<4x8x8xf32>
    %162 = vector.extract_strided_slice %156 {offsets = [3, 0, 0], sizes = [1, 8, 8], strides = [1, 1, 1]} : vector<4x8x8xf32> to vector<1x8x8xf32>
    %163 = vector.shape_cast %162 : vector<1x8x8xf32> to vector<8x8xf32>
    %c1_36 = arith.constant 1 : index
    %c0_37 = arith.constant 0 : index
    %c0_38 = arith.constant 0 : index
    %164 = vector.load %arg9[%c1_36, %c0_37, %c0_38] : memref<2x8x8xf32, #tpu.memory_space<vmem>>, vector<1x8x8xf32>
    %165 = vector.shape_cast %164 : vector<1x8x8xf32> to vector<8x8xf32>
    %166 = vector.shape_cast %163 : vector<8x8xf32> to vector<1x8x8xf32>
    tpu.vector_store %arg9[%c1_36, %c0_37, %c0_38], %166 {strides = array<i32>} : memref<2x8x8xf32, #tpu.memory_space<vmem>>, vector<1x8x8xf32>,
    %cst_39 = arith.constant 0.000000e+00 : f32
    %167 = vector.broadcast %cst_39 : f32 to vector<4x1x8xf32>
    %168 = vector.extract_strided_slice %136 {offsets = [0, 0, 0], sizes = [4, 7, 8], strides = [1, 1, 1]} : vector<4x8x8xf32> to vector<4x7x8xf32>
    %169 = tpu.concatenate %167, %168 in 1 : vector<4x1x8xf32>, vector<4x7x8xf32> -> vector<4x8x8xf32>
    %170 = arith.addf %125, %169 : vector<4x8x8xf32>
    %171 = arith.addf %170, %161 : vector<4x8x8xf32>
    %172 = vector.shape_cast %101 : vector<4x8x8xf32> to vector<32x8xf32>
    %c0_40 = arith.constant 0 : index
    %c0_41 = arith.constant 0 : index
    %173 = vector.load %arg6[%c0_40, %c0_41] : memref<8x16xf32, #tpu.memory_space<vmem>>, vector<8x16xf32>
    %cst_42 = arith.constant dense<0.000000e+00> : vector<32x16xf32>
    %174 = tpu.matmul %172, %173, %cst_42 {dimension_numbers = #tpu.dot_dimension_numbers<[1], [0], [0], [1], [0, 0, 1, 1], [], []>} : vector<32x8xf32>, vector<8x16xf32>, vector<32x16xf32> -> vector<32x16xf32>
    %175 = vector.shape_cast %171 : vector<4x8x8xf32> to vector<32x8xf32>
    %c0_43 = arith.constant 0 : index
    %c0_44 = arith.constant 0 : index
    %176 = vector.load %arg7[%c0_43, %c0_44] : memref<8x16xf32, #tpu.memory_space<vmem>>, vector<8x16xf32>
    %cst_45 = arith.constant dense<0.000000e+00> : vector<32x16xf32>
    %177 = tpu.matmul %175, %176, %cst_45 {dimension_numbers = #tpu.dot_dimension_numbers<[1], [0], [0], [1], [0, 0, 1, 1], [], []>} : vector<32x8xf32>, vector<8x16xf32>, vector<32x16xf32> -> vector<32x16xf32>
    %178 = arith.addf %174, %177 : vector<32x16xf32>
    %cst_46 = arith.constant 0.000000e+00 : f32
    %179 = vector.broadcast %cst_46 : f32 to vector<32x16xf32>
    %180 = arith.maximumf %178, %179 : vector<32x16xf32>
    %181 = vector.shape_cast %180 : vector<32x16xf32> to vector<4x8x16xf32>
    %c0_47 = arith.constant 0 : index
    %c0_48 = arith.constant 0 : index
    %c0_49 = arith.constant 0 : index
    %c0_50 = arith.constant 0 : index
    %182 = vector.load %arg8[%c0_47, %c0_48, %c0_49, %c0_50] : memref<1x4x8x16xf32, #tpu.memory_space<vmem>>, vector<1x4x8x16xf32>
    %183 = vector.shape_cast %182 : vector<1x4x8x16xf32> to vector<4x8x16xf32>
    %184 = vector.shape_cast %181 : vector<4x8x16xf32> to vector<1x4x8x16xf32>
    tpu.vector_store %arg8[%c0_47, %c0_48, %c0_49, %c0_50], %184 {strides = array<i32>} : memref<1x4x8x16xf32, #tpu.memory_space<vmem>>, vector<1x4x8x16xf32>,
    return
  }
  func.func @transform_0(%arg0: i32, %arg1: i32) -> (i32, i32, i32, i32, i32) {
    %c0_i32 = arith.constant 0 : i32
    %c0_i32_0 = arith.constant 0 : i32
    %c0_i32_1 = arith.constant 0 : i32
    %c0_i32_2 = arith.constant 0 : i32
    return %arg0, %arg1, %c0_i32, %c0_i32_0, %c0_i32_1 : i32, i32, i32, i32, i32
  }
  func.func @transform_1(%arg0: i32, %arg1: i32) -> (i32, i32) {
    %c0_i32 = arith.constant 0 : i32
    %c0_i32_0 = arith.constant 0 : i32
    %c0_i32_1 = arith.constant 0 : i32
    return %c0_i32, %c0_i32_0 : i32, i32
  }
  func.func @transform_2(%arg0: i32, %arg1: i32) -> (i32, i32, i32) {
    %c0_i32 = arith.constant 0 : i32
    %c0_i32_0 = arith.constant 0 : i32
    %c0_i32_1 = arith.constant 0 : i32
    %c0_i32_2 = arith.constant 0 : i32
    return %c0_i32, %c0_i32_0, %c0_i32_1 : i32, i32, i32
  }
  func.func @transform_3(%arg0: i32, %arg1: i32) -> (i32, i32, i32) {
    %c0_i32 = arith.constant 0 : i32
    %c0_i32_0 = arith.constant 0 : i32
    %c0_i32_1 = arith.constant 0 : i32
    %c0_i32_2 = arith.constant 0 : i32
    return %c0_i32, %c0_i32_0, %c0_i32_1 : i32, i32, i32
  }
  func.func @transform_4(%arg0: i32, %arg1: i32) -> (i32, i32) {
    %c0_i32 = arith.constant 0 : i32
    %c0_i32_0 = arith.constant 0 : i32
    %c0_i32_1 = arith.constant 0 : i32
    return %c0_i32, %c0_i32_0 : i32, i32
  }
  func.func @transform_5(%arg0: i32, %arg1: i32) -> (i32, i32) {
    %c0_i32 = arith.constant 0 : i32
    %c0_i32_0 = arith.constant 0 : i32
    %c0_i32_1 = arith.constant 0 : i32
    return %c0_i32, %c0_i32_0 : i32, i32
  }
  func.func @transform_6(%arg0: i32, %arg1: i32) -> (i32, i32, i32, i32) {
    %c0_i32 = arith.constant 0 : i32
    %c0_i32_0 = arith.constant 0 : i32
    %c0_i32_1 = arith.constant 0 : i32
    return %arg0, %arg1, %c0_i32, %c0_i32_0 : i32, i32, i32, i32
  }
}

</mosaic_0001>

<bundles_post_ra>
// kernel: tpu_custom_call.1
= control target key start
LH: loop header
LB: loop body
LE: loop exit
PB: predicated region body
PF: predicated region fallthrough
CT: control target
= control target key end

     0   :  { %s2192_s0 = inlined_call_operand.hbm [shape: f32[2,8,2,8,16], index: 0, kind: input, shape index: {}]   ;;  %s2193_s1 = inlined_call_operand.hbm [shape: f32[8,8], index: 1, kind: input, shape index: {}]   ;;  %s2194_s2 = inlined_call_operand.hbm [shape: f32[3,3,8], index: 2, kind: input, shape index: {}]   ;;  %s2195_s3 = inlined_call_operand.hbm [shape: f32[3,3,8], index: 3, kind: input, shape index: {}]   ;;  %s2196_s4 = inlined_call_operand.hbm [shape: f32[8,16], index: 4, kind: input, shape index: {}]   ;;  %s2197_s5 = inlined_call_operand.hbm [shape: f32[8,16], index: 5, kind: input, shape index: {}]   ;;  %s2198_s6 = inlined_call_operand.hbm [shape: f32[2,8,8,16], index: 6, kind: output, shape index: {}]  }
   0x1   :  { %2204 = sst [smem:[#allocation24_spill]] %s2193_s1 }
   0x2   :  { %2205 = sst [smem:[#allocation25_spill]] %s2194_s2 }
   0x3   :  { %2206 = sst [smem:[#allocation26_spill]] %s2195_s3 }
   0x4   :  { %2207 = sst [smem:[#allocation27_spill]] %s2196_s4 }
   0x5   :  { %2208 = sst [smem:[#allocation28_spill]] %s2197_s5 }
   0x6   :  { %11 = vsyncpa [#allocation4], 0 }
   0x7   :  { %13 = vsyncpa [#allocation4 + $0x1], 0 }
   0x8   :  { %14 = vsyncpa [#allocation7], 0 }
   0x9   :  { %15 = vsyncpa [#allocation10], 0 }
   0xa   :  { %16 = vsyncpa [#allocation13], 0 }
   0xb   :  { %17 = vsyncpa [#allocation5], 0 }
   0xc   :  { %19 = vsyncpa [#allocation5 + $0x1], 0  ;;  %s1680_s21 = smov 0   ;;  %s1682_s22 = smov 0  }
   0xd   :  { %s1684_s23 = smov 0   ;;  %s1686_s24 = smov 0  }
   0xe   :  { %s1688_s25 = smov 0   ;;  %s1690_s26 = smov 0  }
   0xf   :  { %s1692_s27 = smov 0   ;;  %s1694_s28 = smov 0  }
  0x10 LB: > { %2209 = sst [smem:[#allocation20_spill]] %s1602_s21  ;;  %s2199_s29 = sadd.s32 4294967295, %s1630_s28   ;;  %s1630_s28 = sphi %s1694_s28, %s25_s28   ;;  %s1626_s27 = sphi %s1692_s27, %s2236_s27   ;;  %s1622_s26 = sphi %s1690_s26, %s2235_s26   ;;  %s1618_s25 = sphi %s1688_s25, %s2234_s25   ;;  %s1614_s24 = sphi %s1686_s24, %s2233_s24   ;;  %s1610_s23 = sphi %s1684_s23, %s2232_s23   ;;  %s1606_s22 = sphi %s1682_s22, %s2231_s22   ;;  %s1602_s21 = sphi %s1680_s21, %s2230_s21  }
  0x11   : > { %p1145_p0 = scmp.ge.s32.totalorder %s1630_s28, 1  ;;  %p1724_p1 = scmp.eq.s32.totalorder %s2199_s29, 0 }
  0x12   : > { %p203_p2 = scmp.lt.s32.totalorder %s1630_s28, 5  ;;  %s2211_s1 = sld [smem:[#allocation24_spill]] }
  0x13   : > { %s1632_s11 = smov [#allocation6]   ;;  %s2214_s3 = sld [smem:[#allocation26_spill]] }
  0x14   : > { %p1732_p3 = pnand %p1145_p0, %p203_p2  ;;  %s217_s12 = sshll.u32 %s1632_s11, 4  ;;  %s218_s12 = int_to_ptr.vmem [resolvable:$true] %s217_s12 }
  0x15   : > { %s1633_s17 = smov [#allocation9]   ;;  %s2215_s2 = sld [smem:[#allocation25_spill]] }
  0x16   : > { %p1227_p4 = pneg %p1732_p3  ;;  %s242_s18 = sshll.u32 %s1633_s17, 4  ;;  %s243_s18 = int_to_ptr.vmem [resolvable:$true] %s242_s18 }
  0x17   : > { %s1634_s8 = smov 64   ;;  %s1635_s11 = smov 4  }
  0x18   : > { %s215_s9 = sshll.u32 %s2211_s1, 4  ;;  %p1740_p5 = pnand %p1227_p4, %p1724_p1  ;;  %s216_s9 = int_to_ptr.hbm [resolvable:$true] %s215_s9 }
  0x19   : > { %s240_s16 = sshll.u32 %s2214_s3, 4  ;;  %s2216_s4 = sld [smem:[#allocation27_spill]]  ;;  %s241_s16 = int_to_ptr.hbm [resolvable:$true] %s240_s16 }
  0x1a   : > { %1230 = dma.hbm_to_vmem [thread:$0]  (!%p1740_p5), %s216_s9, 128, %s218_s12, [#allocation7]  }
  0x1b   : > { %s226_s7 = sshll.u32 %s2215_s2, 4  ;;  %s1636_s9 = smov [#allocation8]   ;;  %s227_s7 = int_to_ptr.hbm [resolvable:$true] %s226_s7 }
  0x1c   : > { %1236 = dma.hbm_to_vmem [thread:$0]  (!%p1740_p5), %s241_s16, 192, %s243_s18, [#allocation10], %s1634_s8, %s1634_s8, %s1635_s11  }
  0x1d   : > { %s228_s12 = sshll.u32 %s1636_s9, 4  ;;  %s1637_s17 = smov [#allocation11]   ;;  %s229_s12 = int_to_ptr.vmem [resolvable:$true] %s228_s12 }
  0x1e   : > { %1233 = dma.hbm_to_vmem [thread:$0]  (!%p1740_p5), %s227_s7, 192, %s229_s12, [#allocation7], %s1634_s8, %s1634_s8, %s1635_s11  }
  0x1f   : > { %s255_s29 = sshll.u32 %s2216_s4, 4  ;;  %s257_s16 = sshll.u32 %s1637_s17, 4  ;;  %s256_s29 = int_to_ptr.hbm [resolvable:$true] %s255_s29  ;;  %s258_s16 = int_to_ptr.vmem [resolvable:$true] %s257_s16 }
  0x20   : > { %s2217_s5 = sld [smem:[#allocation28_spill]]  ;;  %s1638_s14 = smov [#allocation12]  }
  0x21   : > { %1239 = dma.hbm_to_vmem [thread:$0]  (!%p1740_p5), %s256_s29, 128, %s258_s16, [#allocation10]  }
  0x22   : > { %s269_s15 = sshll.u32 %s1638_s14, 4  ;;  %s1144_s7 = sadd.s32 4294967294, %s1630_s28   ;;  %s270_s15 = int_to_ptr.vmem [resolvable:$true] %s269_s15 }
  0x23   : > { %s34_s8 = sadd.s32 1, %s1622_s26  ;;  %s37_s11 = sadd.s32 1, %s1626_s27 }
  0x24   : > { %p35_p6 = scmp.ge.s32.totalorder %s34_s8, 2  ;;  %s46_s9 = sadd.s32 1, %s1610_s23 }
  0x25   : > { %p53_p7 = scmp.ne.s32.totalorder %s1610_s23, %s1606_s22  ;;  %p54_p8 = scmp.eq.s32.totalorder %s1630_s28, 0 }
  0x26   : > { %s267_s20 = sshll.u32 %s2217_s5, 4  ;;  %s2238_s8 = smov (%p35_p6, %s34_s8), 0  ;;  %s268_s20 = int_to_ptr.hbm [resolvable:$true] %s267_s20 }
  0x27   : > { %1242 = dma.hbm_to_vmem [thread:$0]  (!%p1740_p5), %s268_s20, 128, %s270_s15, [#allocation13]  }
  0x28   : > { %2218 = sst [smem:[#allocation21_spill]] %s2238_s8  ;;  %s2240_s11 = smov (!%p35_p6, %s37_s11), %s1626_s27 }
  0x29   : > { %s42_s29 = ssub.s32 %s1622_s26, %s2238_s8  ;;  %p1778_p9 = por %p54_p8, %p53_p7 }
  0x2a   : > { %p39_p10 = scmp.ge.s32.totalorder %s2240_s11, 2  ;;  %p59_p11 = scmp.ne.s32.totalorder %s1606_s22, %s1602_s21 }
  0x2b   : > { %s2220_s12 = sadd.s32 4294967295, %s1630_s28   ;;  %p196_p13 = scmp.eq.s32.totalorder %s1144_s7, 3 }
  0x2c   : > { %p190_p12 = scmp.eq.s32.totalorder %s2220_s12, 3  ;;  %s2242_s11 = smov (%p39_p10, %s2240_s11), 0 }
  0x2d   : > { %2221 = sst [smem:[#allocation22_spill]] %s2242_s11  ;;  %p1790_p0 = por %p1724_p1, %p59_p11 }
  0x2e   : > { %p1794_p2 = por %p190_p12, %p53_p7  ;;  %s41_s18 = ssub.s32 %s1626_s27, %s2242_s11 }
  0x2f   : > { %p1800_p4 = por %p196_p13, %p59_p11  ;;  %s43_s20 = sor.u32 %s42_s29, %s41_s18 }
  0x30   : > { %p1256_p5 = scmp.lt.s32.totalorder %s1630_s28, 4  ;;  %p44_p6 = scmp.eq.s32.totalorder %s43_s20, 0 }
  0x31   : > { %s2224_s19 = scalar_select %p1800_p4, 1, 0 }
  0x32   : > { %s280_s14 = sand.u32 1, %s1610_s23   ;;  %s1200_s12 = sshll.u32 %s1622_s26, 3 }
  0x33   : > { %2225 = sst [smem:[#allocation23_spill]] %s2224_s19  ;;  %s1152_s15 = sshll.u32 %s280_s14, 6 }
  0x34   : > { %s1807_s7 = scalar_select %p44_p6, %s1610_s23, %s46_s9  }
  0x35   : > { %s1155_s1 = sshll.u32 %s1626_s27, 4  ;;  %s284_s2 = scalar_lea.vmem [#allocation3], %s1152_s15 }
  0x36   : > { %s295_s3 = sshll.u32 %s284_s2, 4  ;;  %s290_s4 = sadd.s32 %s1200_s12, %s1155_s1  ;;  %s296_s3 = int_to_ptr.vmem [resolvable:$true] %s295_s3 }
  0x37   : > { %s1156_s5 = sshll.u32 %s290_s4, 3  ;;  %p1244_p7 = pnand %p1256_p5, %p1778_p9 }
  0x38   : > { %s292_s19 = scalar_lea.hbm %s2192_s0, %s1156_s5  ;;  %s281_s18 = scalar_lea.sflag [#allocation4], %s280_s14 }
  0x39   : > { %s293_s29 = sshll.u32 %s292_s19, 4  ;;  %s1639_s20 = smov 128   ;;  %s294_s29 = int_to_ptr.hbm [resolvable:$true] %s293_s29 }
  0x3a   : > { %s1640_s21 = smov 8   ;;  %307 = sbr.rel (%p1732_p3) target bundleno = 525 (0x20d), region = 44 }
  0x3b   : > { %1246 = dma.hbm_to_vmem [thread:$0]  (!%p1244_p7), %s294_s29, 1024, %s296_s3, %s281_s18, %s1639_s20, %s1639_s20, %s1640_s21  }
  0x3c   : > { %s1819_s1 = sand.u32 (!%p1732_p3), 1, %s1606_s22  }
  0x3d   : > { %s1158_s2 = sshll.u32 (!%p1732_p3), %s1819_s1, 6  ;;  %s310_s4 = scalar_lea.sflag (!%p1732_p3), [#allocation4], %s1819_s1 }
  0x3e   : > { %s1823_s9 = scalar_lea.vmem (!%p1732_p3), [#allocation3], %s1158_s2 }
  0x3f   : > { %1581 = dma.done.wait (%p1790_p0), %s310_s4, 1024  }
  0x40   : > { %1583 = vsyncadd (%p1790_p0), %s310_s4, 4294966272 }
  0x41   : > { %1585 = dma.done.wait (%p1724_p1), [#allocation7], 320  }
  0x42   : > { %1587 = vsyncadd (%p1724_p1), [#allocation7], 4294966976 }
  0x43   : > { %1589 = dma.done.wait (%p1724_p1), [#allocation10], 320  }
  0x44   : > { %1591 = vsyncadd (%p1724_p1), [#allocation10], 4294966976 }
  0x45   : > { %1593 = dma.done.wait (%p1724_p1), [#allocation13], 128  }
  0x46   : > { %1595 = vsyncadd (%p1724_p1), [#allocation13], 4294967168  ;;  %s1164_s3 = sshll.u32 %s1819_s1, 5  ;;  %p1165_p3 = scmp.ne.s32.totalorder %s1614_s24, 0 }
  0x47   : > { %s1842_s5 = scalar_lea.vmem [#allocation14], %s1164_s3 }
  0x48   : > { %373 = sbr.rel (%p1165_p3) target bundleno = 80 (0x50), region = 72 }
  0x4d   : > { %vm374_vm0 = vcmask 64512   ;;  %v1641_v0 = vmov 0.0  }
  0x4e   : > { %375 = vst.msk [vmem:[#allocation2] sm:$0xff] %vm374_vm0, %v1641_v0 }
  0x4f   : > { %376 = vst.msk [vmem:[#allocation2 + $0x8] sm:$0xff] %vm374_vm0, %v1641_v0 }
  0x50 PF: > { %v1846_v1 = vld [vmem:[%s1823_s9 + $0x18] sm:$0xff]  ;;  %v1849_v2 = vld [vmem:[%s1823_s9 + $0x8] sm:$0xff]  ;;  %v1852_v3 = vld [vmem:[%s1823_s9 + $0x20] sm:$0xff]  ;;  %s1642_s21 = smov 120   ;;  %s1643_s30 = smov 8   ;;  %vm387_vm1 = vcmask 64512  }
  0x51   : > { %529 = vrot.lane.b32.xlu2 %v1846_v1, %s1642_s21  ;;  %527 = vrot.lane.b32.xlu1 %v1849_v2, %s1642_s21  ;;  %v1861_v4 = vld [vmem:[%s1823_s9 + $0x10] sm:$0xff]  ;;  %v1864_v5 = vld [vmem:[%s1823_s9] sm:$0xff]  ;;  %v1875_v7 = vld [vmem:[#allocation9 + $0x4] sm:$0x7]  ;;  %vm656_vm2 = vcmask 1040384   ;;  %vm982_vm3 = vcmask 130048  }
  0x52   : > { %437 = vrot.lane.b32.xlu0 %v1852_v3, %s1642_s21  ;;  %v1867_v6 = vld [vmem:[%s1823_s9 + $0x30] sm:$0xff]  ;;  %v699_v8 = vperm.slane %v1875_v7, 2  ;;  %v1879_v9 = vld [vmem:[%s1823_s9 + $0x38] sm:$0xff]  ;;  %v1882_v10 = vld [vmem:[%s1823_s9 + $0x28] sm:$0xff]  ;;  %v766_v14 = vperm.slane %v1875_v7, 0  ;;  %s1195_s10 = sshll.u32 %s1614_s24, 2 }
  0x53   : > { %v1889_v11 = vld [vmem:[#allocation9 + $0x8] sm:$0x7]  ;;  %v1897_v15 = vld [vmem:[#allocation9] sm:$0x7]  ;;  %v386_v18 = vld [vmem:[#allocation6] sm:$0xff]  ;;  %s1196_s8 = sshll.u32 %s1618_s25, 3 }
  0x54   : > { %v737_v12 = vperm.slane %v1889_v11, 2  ;;  %v775_v13 = vperm.slane %v1889_v11, 0  ;;  %v793_v16 = vperm.slane %v1897_v15, 2  ;;  %v822_v17 = vperm.slane %v1897_v15, 0  ;;  %1201 = vmatpush.msra.mxu2 %v386_v18  ;;  %1202 = vmatpush.msra.mxu3 %v386_v18  ;;  %s999_s11 = sadd.s32 %s1196_s8, %s1195_s10  ;;  %s1002_s15 = sshll.u32 %s1842_s5, 4  ;;  %s1003_s15 = int_to_ptr.vmem [resolvable:$true] %s1002_s15 }
  0x55   : > { %1172 = vmatmul.msk.f32.vlgmr.msra.gmra.mxu2 %vm387_vm1, %v1852_v3  ;;  %415 = vmatpush.msra.mxu0 %v386_v18  ;;  %s1197_s13 = sshll.u32 %s999_s11, 3  ;;  %s988_s25 = scalar_lea.sflag [#allocation5], %s1819_s1 }
  0x56   : > { %509 = vmatpush.msrb.mxu2 %v386_v18  ;;  %464 = vmatpush.msra.mxu1 %v386_v18  ;;  %s1001_s14 = scalar_lea.hbm %s2198_s6, %s1197_s13  ;;  %s1540_s2 = scalar_lea.hbm %s2198_s6, 128 }
  0x57   : > { %1170 = vmatmul.msk.f32.vlgmr.msra.gmra.mxu0 %vm387_vm1, %v1864_v5  ;;  %558 = vmatpush.msrb.mxu3 %v386_v18  ;;  %s1004_s24 = sshll.u32 %s1001_s14, 4  ;;  %s1005_s24 = int_to_ptr.hbm [resolvable:$true] %s1004_s24 }
  0x58   : > { %s1534_s12 = sshra.s32 %s1005_s24, 4  ;;  %s1535_s12 = int_to_ptr.hbm [resolvable:$true] %s1534_s12 }
  0x59   : > { %435 = vrot.lane.b32.xlu2 %v1861_v4, %s1642_s21  ;;  %433 = vrot.lane.b32.xlu1 %v1864_v5, %s1642_s21  ;;  %s1536_s29 = scalar_lea.hbm %s1535_s12, 32  ;;  %p1541_p10 = scmp.lt.s32.totalorder %s1535_s12, %s2198_s6 }
  0x5a   : > { %439 = vrot.lane.b32.xlu0 %v1867_v6, %s1642_s21  ;;  %p1537_p1 = scmp.ne.s32.totalorder %s1535_s12, %s1536_s29  ;;  %p1542_p11 = scmp.lt.s32.totalorder %s1540_s2, %s1536_s29 }
  0x5c   : > { %p1538_p8 = pnand %p1537_p1, %p1794_p2  ;;  %p1543_p12 = por %p1542_p11, %p1541_p10 }
  0x5d   : > { %1173 = vmatmul.msk.f32.gmra.mxu2 %vm387_vm1, %v1867_v6 }
  0x5e   : > { %p1539_p9 = pneg %p1538_p8 }
  0x5f   : > { %1171 = vmatmul.msk.f32.gmra.mxu0 %vm387_vm1, %v1861_v4 }
  0x60   : > { %p1544_p13 = pnand %p1543_p12, %p1539_p9 }
  0x61   : > { %701 = vrot.lane.b32.xlu2 %v699_v8, %s1643_s30  ;;  %533 = vrot.lane.b32.xlu1 %v1879_v9, %s1642_s21 }
  0x62   : > { %531 = vrot.lane.b32.xlu0 %v1882_v10, %s1642_s21 }
  0x65   : > { %1178 = vmatmul.msk.f32.vlgmr.msrb.gmra.mxu2 %vm387_vm1, %v1849_v2 }
  0x69   : > { %739 = vrot.lane.b32.xlu2 %v737_v12, %s1643_s30  ;;  %777 = vrot.lane.b32.xlu1 %v775_v13, %s1643_s30 }
  0x6a   : > { %768 = vrot.lane.b32.xlu0 %v766_v14, %s1643_s30 }
  0x6d   : > { %1179 = vmatmul.msk.f32.gmra.mxu2 %vm387_vm1, %v1846_v1 }
  0x71   : > { %795 = vrot.lane.b32.xlu1 %v793_v16, %s1643_s30  ;;  %v1978_v16 = vperm.slane %v1875_v7, 1 }
  0x72   : > { %824 = vrot.lane.b32.xlu0 %v822_v17, %s1643_s30  ;;  %v1981_v17 = vperm.slane %v1889_v11, 1 }
  0x73   : > { %v695_v18 = vmul.f32 %v1978_v16, %v1864_v5 }
  0x74   : > { %v730_v7 = vmul.f32 %v1846_v1, %v1981_v17 }
  0x75   : > { %1180 = vmatmul.msk.f32.gmra.mxu2 %vm387_vm1, %v1882_v10 }
  0x7d   : > { %1181 = vmatmul.msk.f32.gmra.mxu2 %vm387_vm1, %v1879_v9 }
  0xab   : > { %v530_v19 = vpop.permute.xlu2 %529 }
  0xb3   : > { %v436_v20 = vpop.permute.xlu2 %435 }
  0xbb   : > { %v702_v21 = vpop.permute.xlu2 %701 }
  0xbc   : > { %v704_v22 = vmul.f32 %v702_v21, %v1864_v5  ;;  %v705_v23 = vmul.f32 %v702_v21, %v1861_v4  ;;  %v706_v51 = vmul.f32 %v702_v21, %v1852_v3  ;;  %v707_v54 = vmul.f32 %v702_v21, %v1867_v6 }
  0xbe   : > { %712 = vrot.lane.b32.xlu2 %v704_v22, %s1642_s21 }
  0xc3   : > { %v528_v24 = vpop.permute.xlu1 %527  ;;  %v1922_v25 = vpop.permute.xlu2 %739 }
  0xc4   : > { %v438_v26 = vpop.permute.xlu0 %437  ;;  %v742_v27 = vmul.f32 %v1849_v2, %v1922_v25  ;;  %v743_v28 = vmul.f32 %v1846_v1, %v1922_v25  ;;  %v744_v29 = vmul.f32 %v1882_v10, %v1922_v25  ;;  %v745_v12 = vmul.f32 %v1879_v9, %v1922_v25 }
  0xc5   : > { %1176 = vmatmul.msk.f32.vlgmr.msra.gmra.mxu3 %vm387_vm1, %v438_v26 }
  0xc6   : > { %750 = vrot.lane.b32.xlu0 %v742_v27, %s1642_s21  ;;  %714 = vrot.lane.b32.xlu2 %v705_v23, %s1642_s21  ;;  %v696_v23 = vmul.f32 %v1978_v16, %v1861_v4 }
  0xcb   : > { %v434_v30 = vpop.permute.xlu1 %433 }
  0xcc   : > { %v440_v31 = vpop.permute.xlu0 %439  ;;  %1174 = vmatmul.msk.f32.vlgmr.msra.gmra.mxu1 %vm387_vm1, %v434_v30 }
  0xcd   : > { %1177 = vmatmul.msk.f32.gmra.mxu3 %vm387_vm1, %v440_v31 }
  0xce   : > { %752 = vrot.lane.b32.xlu0 %v743_v28, %s1642_s21  ;;  %754 = vrot.lane.b32.xlu2 %v744_v29, %s1642_s21  ;;  %v894_v28 = vld [vmem:[#allocation11] sm:$0xff] }
  0xcf   : > { %964 = vmatpush.msrb.mxu1 %v894_v28 }
  0xd3   : > { %v534_v32 = vpop.permute.xlu1 %533 }
  0xd4   : > { %v532_v33 = vpop.permute.xlu0 %531  ;;  %1175 = vmatmul.msk.f32.gmra.mxu1 %vm387_vm1, %v436_v20 }
  0xd5   : > { %1182 = vmatmul.msk.f32.vlgmr.msrb.gmra.mxu3 %vm387_vm1, %v528_v24 }
  0xd8   : > { %v423_v26 = vpop.f32.mrf.mxu2 }
  0xdb   : > { %v778_v34 = vpop.permute.xlu1 %777 }
  0xdc   : > { %v769_v35 = vpop.permute.xlu0 %768  ;;  %v781_v38 = vmul.f32 %v1846_v1, %v778_v34  ;;  %v782_v44 = vmul.f32 %v1882_v10, %v778_v34  ;;  %v780_v49 = vmul.f32 %v1849_v2, %v778_v34  ;;  %v783_v0 = vmul.f32 %v1879_v9, %v778_v34  ;;  %v577_v34 = vld [vmem:[#allocation8 + $0x4] sm:$0x7] }
  0xdd   : > { %1183 = vmatmul.msk.f32.gmra.mxu3 %vm387_vm1, %v530_v19  ;;  %v772_v37 = vmul.f32 %v769_v35, %v1861_v4  ;;  %v773_v43 = vmul.f32 %v769_v35, %v1852_v3  ;;  %v771_v48 = vmul.f32 %v769_v35, %v1864_v5  ;;  %v774_v63 = vmul.f32 %v769_v35, %v1867_v6  ;;  %v895_v5 = vld [vmem:[#allocation12] sm:$0xff]  ;;  %v417_v4 = vpop.f32.mrf.mxu0 }
  0xde   : > { %v729_v19 = vmul.f32 %v1849_v2, %v1981_v17  ;;  %923 = vmatpush.msrb.mxu0 %v895_v5 }
  0xdf   : > { %v785_v46 = vadd.f32 %v781_v38, %v772_v37  ;;  %v786_v47 = vadd.f32 %v782_v44, %v773_v43  ;;  %v784_v53 = vadd.f32 %v780_v49, %v771_v48  ;;  %v787_v13 = vadd.f32 %v783_v0, %v774_v63 }
  0xe0   : > { %v1995_v27 = vpop.f32.mrf.mxu2  ;;  %v2007_v38 = vperm.slane %v577_v34, 1  ;;  %v431_v43 = vmax.f32 %v423_v26, 0.0 }
  0xe1   : > { %v867_v50 = vrot.slane %v785_v46, 7  ;;  %v868_v52 = vrot.slane %v786_v47, 7  ;;  %v866_v55 = vrot.slane %v784_v53, 7  ;;  %v869_v14 = vrot.slane %v787_v13, 7  ;;  %v576_v47 = vld [vmem:[#allocation8] sm:$0x7] }
  0xe2   : > { %v2019_v53 = vperm.slane %v577_v34, 0  ;;  %v2033_v0 = vmul.f32 %v2007_v38, %v431_v43  ;;  %v432_v13 = vmax.f32 %v1995_v27, 0.0 }
  0xe3   : > { %v796_v36 = vpop.permute.xlu1 %795 }
  0xe4   : > { %v825_v39 = vpop.permute.xlu0 %824  ;;  %v799_v40 = vmul.f32 %v1846_v1, %v796_v36  ;;  %v798_v41 = vmul.f32 %v1849_v2, %v796_v36  ;;  %v800_v58 = vmul.f32 %v1882_v10, %v796_v36  ;;  %v801_v61 = vmul.f32 %v1879_v9, %v796_v36 }
  0xe5   : > { %1184 = vmatmul.msk.f32.gmra.mxu3 %vm387_vm1, %v532_v33  ;;  %v827_v42 = vmul.f32 %v1849_v2, %v825_v39  ;;  %v829_v56 = vmul.f32 %v1882_v10, %v825_v39  ;;  %v828_v57 = vmul.f32 %v1846_v1, %v825_v39  ;;  %v830_v62 = vmul.f32 %v1879_v9, %v825_v39  ;;  %v420_v44 = vpop.f32.mrf.mxu0 }
  0xe6   : > { %808 = vrot.lane.b32.xlu0 %v799_v40, %s1642_s21  ;;  %806 = vrot.lane.b32.xlu1 %v798_v41, %s1642_s21  ;;  %v2009_v39 = vperm.slane %v577_v34, 2  ;;  %v429_v40 = vmax.f32 %v417_v4, 0.0 }
  0xe7   : > { %v835_v45 = vrot.slane %v827_v42, 7  ;;  %v837_v59 = vrot.slane %v829_v56, 7  ;;  %v836_v60 = vrot.slane %v828_v57, 7  ;;  %v838_v8 = vrot.slane %v830_v62, 7  ;;  %v578_v42 = vld [vmem:[#allocation8 + $0x8] sm:$0x7] }
  0xe8   : > { %v511_v30 = vpop.f32.mrf.mxu2  ;;  %v2013_v48 = vperm.slane %v578_v42, 1  ;;  %v580_v49 = vmul.f32 %v2007_v38, %v429_v40  ;;  %v430_v56 = vmax.f32 %v420_v44, 0.0 }
  0xe9   : > { %839 = vrot.lane.b32.xlu2 %v835_v45, %s1642_s21  ;;  %v523_v46 = vmax.f32 %v511_v30, 0.0  ;;  %v697_v30 = vmul.f32 %v1978_v16, %v1852_v3 }
  0xed   : > { %1185 = vmatmul.msk.f32.gmra.mxu3 %vm387_vm1, %v534_v32 }
  0xee   : > { %872 = vrot.lane.b32.xlu0 %v867_v50, %s1642_s21  ;;  %716 = vrot.lane.b32.xlu1 %v706_v51, %s1642_s21  ;;  %v2017_v51 = vperm.slane %v578_v42, 0 }
  0xf0   : > { %v2005_v37 = vpop.f32.mrf.mxu2 }
  0xf1   : > { %874 = vrot.lane.b32.xlu2 %v868_v52, %s1642_s21 }
  0xf6   : > { %718 = vrot.lane.b32.xlu0 %v707_v54, %s1642_s21  ;;  %870 = vrot.lane.b32.xlu1 %v866_v55, %s1642_s21  ;;  %v2022_v54 = vperm.slane %v1897_v15, 1  ;;  %v2024_v55 = vperm.slane %v578_v42, 2  ;;  %v594_v15 = vmul.f32 %v2013_v48, %v523_v46 }
  0xf9   : > { %810 = vrot.lane.b32.xlu2 %v800_v58, %s1642_s21 }
  0xfe   : > { %843 = vrot.lane.b32.xlu0 %v837_v59, %s1642_s21  ;;  %841 = vrot.lane.b32.xlu1 %v836_v60, %s1642_s21  ;;  %v2029_v60 = vperm.slane %v576_v47, 1 }
 0x101   : > { %812 = vrot.lane.b32.xlu2 %v801_v61, %s1642_s21  ;;  %v524_v61 = vmax.f32 %v2005_v37, 0.0 }
 0x106   : > { %845 = vrot.lane.b32.xlu0 %v838_v8, %s1642_s21  ;;  %756 = vrot.lane.b32.xlu1 %v745_v12, %s1642_s21  ;;  %v789_v12 = vmul.f32 %v1849_v2, %v2022_v54  ;;  %v2049_v2 = vperm.slane %v576_v47, 2 }
 0x10e   : > { %876 = vrot.lane.b32.xlu1 %v869_v14, %s1642_s21  ;;  %v2039_v14 = vperm.slane %v576_v47, 0 }
 0x118   : > { %v713_v20 = vpop.permute.xlu2 %712 }
 0x119   : > { %v724_v21 = vadd.f32 %v713_v20, %v695_v18 }
 0x11b   : > { %v1987_v22 = vadd.f32 %v729_v19, %v724_v21  ;;  %v2042_v19 = vpop.f32.mrf.mxu2  ;;  %v581_v21 = vmul.f32 %v2007_v38, %v430_v56 }
 0x11c   : > { %v525_v5 = vmax.f32 %v2042_v19, 0.0 }
 0x120   : > { %v715_v24 = vpop.permute.xlu2 %714 }
 0x121   : > { %v725_v25 = vadd.f32 %v715_v24, %v696_v23  ;;  %v626_v24 = vmul.f32 %v2029_v60, %v523_v46 }
 0x123   : > { %v1993_v11 = vadd.f32 %v730_v7, %v725_v25  ;;  %v595_v25 = vmul.f32 %v2013_v48, %v524_v61 }
 0x128   : > { %v2001_v33 = vpop.permute.xlu2 %754 }
 0x138   : > { %v1997_v29 = vpop.permute.xlu0 %750 }
 0x140   : > { %v753_v35 = vpop.permute.xlu0 %752 }
 0x141   : > { %v763_v40 = vadd.f32 %v753_v35, %v1993_v11 }
 0x143   : > { %v840_v52 = vpop.permute.xlu2 %839 }
 0x144   : > { %v851_v4 = vsel %vm656_vm2, 0.0, %v840_v52 }
 0x148   : > { %v1999_v31 = vpop.f32.mrf.mxu3 }
 0x149   : > { %v466_v32 = vpop.f32.mrf.mxu1 }
 0x14a   : > { %v478_v41 = vmax.f32 %v466_v32, 0.0  ;;  %v480_v32 = vmax.f32 %v1999_v31, 0.0 }
 0x14b   : > { %v2061_v46 = vpop.permute.xlu2 %874 }
 0x14c   : > { %v585_v50 = vmul.f32 %v2009_v39, %v478_v41  ;;  %v612_v18 = vmul.f32 %v2019_v53, %v478_v41 }
 0x14e   : > { %v589_v8 = vadd.f32 %v585_v50, %v580_v49  ;;  %v665_v50 = vld [vmem:[#allocation2] sm:$0xff] }
 0x150   : > { %v2003_v36 = vpop.f32.mrf.mxu3  ;;  %v598_v27 = vadd.f32 %v594_v15, %v589_v8 }
 0x151   : > { %v2011_v45 = vpop.f32.mrf.mxu1 }
 0x152   : > { %v479_v57 = vmax.f32 %v2011_v45, 0.0  ;;  %v731_v45 = vmul.f32 %v1882_v10, %v1981_v17 }
 0x154   : > { %v586_v23 = vmul.f32 %v2009_v39, %v479_v57  ;;  %v613_v15 = vmul.f32 %v2019_v53, %v479_v57  ;;  %v596_v57 = vmul.f32 %v2013_v48, %v525_v5 }
 0x156   : > { %v590_v41 = vadd.f32 %v586_v23, %v581_v21  ;;  %v583_v21 = vmul.f32 %v2007_v38, %v432_v13  ;;  %v520_v23 = vpop.f32.mrf.mxu2 }
 0x158   : > { %v560_v58 = vpop.f32.mrf.mxu3  ;;  %v2027_v59 = vpop.permute.xlu0 %808 }
 0x159   : > { %v572_v62 = vmax.f32 %v560_v58, 0.0  ;;  %v807_v63 = vpop.permute.xlu1 %806 }
 0x15a   : > { %v818_v28 = vadd.f32 %v807_v63, %v789_v12  ;;  %v587_v63 = vmul.f32 %v2009_v39, %v480_v32 }
 0x15b   : > { %v617_v20 = vmul.f32 %v2017_v51, %v572_v62  ;;  %v603_v7 = vmul.f32 %v2024_v55, %v572_v62  ;;  %v640_v34 = vmul.f32 %v2039_v14, %v572_v62  ;;  %v631_v3 = vmul.f32 %v2049_v2, %v572_v62 }
 0x15c   : > { %v855_v56 = vadd.f32 %v851_v4, %v818_v28  ;;  %v599_v28 = vadd.f32 %v595_v25, %v590_v41  ;;  %v762_v4 = vadd.f32 %v1997_v29, %v1987_v22  ;;  %v732_v25 = vmul.f32 %v1879_v9, %v1981_v17 }
 0x15d   : > { %v621_v26 = vadd.f32 %v617_v20, %v612_v18  ;;  %v607_v42 = vadd.f32 %v603_v7, %v598_v27  ;;  %v648_v12 = vrot.slane %v640_v34, 7  ;;  %v698_v7 = vmul.f32 %v1978_v16, %v1867_v6 }
 0x15e   : > { %v627_v27 = vmul.f32 %v2029_v60, %v524_v61  ;;  %v526_v6 = vmax.f32 %v520_v23, 0.0  ;;  %v481_v41 = vmax.f32 %v2003_v36, 0.0  ;;  %v860_v36 = vld [vmem:[#allocation2 + $0x8] sm:$0xff] }
 0x15f   : > { %v671_v37 = vrot.slane %v621_v26, 7  ;;  %v657_v38 = vsel %vm656_vm2, 0.0, %v648_v12 }
 0x160   : > { %v563_v43 = vpop.f32.mrf.mxu3  ;;  %v873_v44 = vpop.permute.xlu0 %872 }
 0x161   : > { %v573_v47 = vmax.f32 %v563_v43, 0.0  ;;  %v883_v49 = vsel %vm656_vm2, 0.0, %v873_v44  ;;  %v717_v31 = vpop.permute.xlu1 %716  ;;  %v679_v52 = vsel %vm656_vm2, 0.0, %v671_v37  ;;  %v591_v37 = vadd.f32 %v587_v63, %v2033_v0 }
 0x162   : > { %v887_v11 = vadd.f32 %v883_v49, %v763_v40  ;;  %v726_v35 = vadd.f32 %v717_v31, %v697_v30  ;;  %v683_v58 = vadd.f32 %v679_v52, %v607_v42  ;;  %v635_v30 = vadd.f32 %v631_v3, %v626_v24  ;;  %v2091_v31 = vpop.permute.xlu2 %810 }
 0x163   : > { %v618_v8 = vmul.f32 %v2017_v51, %v573_v47  ;;  %v604_v62 = vmul.f32 %v2024_v55, %v573_v47  ;;  %v641_v34 = vmul.f32 %v2039_v14, %v573_v47  ;;  %v632_v29 = vmul.f32 %v2049_v2, %v573_v47 }
 0x164   : > { %v2070_v18 = vadd.f32 %v887_v11, %v855_v56  ;;  %v735_v19 = vadd.f32 %v731_v45, %v726_v35  ;;  %v687_v20 = vadd.f32 %v683_v58, %v665_v50  ;;  %v661_v45 = vadd.f32 %v657_v38, %v635_v30 }
 0x165   : > { %v622_v26 = vadd.f32 %v618_v8, %v613_v15  ;;  %v608_v61 = vadd.f32 %v604_v62, %v599_v28  ;;  %v614_v3 = vmul.f32 %v2019_v53, %v480_v32  ;;  %v628_v49 = vmul.f32 %v2029_v60, %v525_v5 }
 0x166   : > { %1190 = vmatmul.msk.f32.vlgmr.msrb.gmra.mxu1 %vm387_vm1, %v687_v20  ;;  %v649_v50 = vrot.slane %v641_v34, 7  ;;  %v588_v47 = vmul.f32 %v2009_v39, %v481_v41  ;;  %v790_v58 = vmul.f32 %v1846_v1, %v2022_v54  ;;  %v792_v5 = vmul.f32 %v1879_v9, %v2022_v54 }
 0x167   : > { %v672_v13 = vrot.slane %v622_v26, 7  ;;  %v600_v63 = vadd.f32 %v596_v57, %v591_v37  ;;  %v597_v15 = vmul.f32 %v2013_v48, %v526_v6  ;;  %v636_v12 = vadd.f32 %v632_v29, %v627_v27 }
 0x168   : > { %v566_v16 = vpop.f32.mrf.mxu3  ;;  %v719_v40 = vpop.permute.xlu0 %718  ;;  %v629_v62 = vmul.f32 %v2029_v60, %v526_v6  ;;  %v658_v39 = vsel %vm656_vm2, 0.0, %v649_v50  ;;  %v884_v1 = vsel %vm656_vm2, 0.0, %v2061_v46  ;;  %v615_v9 = vmul.f32 %v2019_v53, %v481_v41 }
 0x169   : > { %v574_v24 = vmax.f32 %v566_v16, 0.0  ;;  %v727_v42 = vadd.f32 %v719_v40, %v698_v7  ;;  %v871_v43 = vpop.permute.xlu1 %870  ;;  %v680_v22 = vsel %vm656_vm2, 0.0, %v672_v13  ;;  %v764_v7 = vadd.f32 %v2001_v33, %v735_v19 }
 0x16a   : > { %v882_v44 = vsel %vm656_vm2, 0.0, %v871_v43  ;;  %v684_v0 = vadd.f32 %v680_v22, %v608_v61  ;;  %v592_v27 = vadd.f32 %v588_v47, %v583_v21  ;;  %v819_v60 = vadd.f32 %v2027_v59, %v790_v58  ;;  %v813_v40 = vpop.permute.xlu2 %812 }
 0x16b   : > { %v619_v17 = vmul.f32 %v2017_v51, %v574_v24  ;;  %v605_v52 = vmul.f32 %v2024_v55, %v574_v24  ;;  %v886_v56 = vadd.f32 %v882_v44, %v762_v4  ;;  %v2095_v35 = vadd.f32 %v732_v25, %v727_v42 }
 0x16c   : > { %v688_v11 = vadd.f32 %v684_v0, %v661_v45  ;;  %v642_v20 = vmul.f32 %v2039_v14, %v574_v24  ;;  %v633_v34 = vmul.f32 %v2049_v2, %v574_v24  ;;  %v662_v38 = vadd.f32 %v658_v39, %v636_v12 }
 0x16d   : > { %v623_v32 = vadd.f32 %v619_v17, %v614_v3  ;;  %v890_v8 = vadd.f32 %v886_v56, %v860_v36  ;;  %v609_v28 = vadd.f32 %v605_v52, %v600_v63  ;;  %v888_v6 = vadd.f32 %v884_v1, %v764_v7 }
 0x16e   : > { %1191 = vmatmul.msk.f32.gmra.mxu1 %vm387_vm1, %v688_v11  ;;  %v650_v37 = vrot.slane %v642_v20, 7  ;;  %v601_v24 = vadd.f32 %v597_v15, %v592_v27  ;;  %v637_v43 = vadd.f32 %v633_v34, %v628_v49  ;;  %v821_v22 = vadd.f32 %v813_v40, %v792_v5 }
 0x16f   : > { %v673_v23 = vrot.slane %v623_v32, 7  ;;  %1186 = vmatmul.msk.f32.vlgmr.msrb.gmra.mxu0 %vm387_vm1, %v890_v8  ;;  %v791_v52 = vmul.f32 %v1882_v10, %v2022_v54 }
 0x170   : > { %v569_v48 = vpop.f32.mrf.mxu3  ;;  %v844_v26 = vpop.permute.xlu0 %843 }
 0x171   : > { %v575_v57 = vmax.f32 %v569_v48, 0.0  ;;  %v842_v30 = vpop.permute.xlu1 %841  ;;  %v681_v4 = vsel %vm656_vm2, 0.0, %v673_v23  ;;  %v820_v56 = vadd.f32 %v2091_v31, %v791_v52 }
 0x172   : > { %v852_v46 = vsel %vm656_vm2, 0.0, %v842_v30  ;;  %v685_v53 = vadd.f32 %v681_v4, %v609_v28 }
 0x173   : > { %v620_v33 = vmul.f32 %v2017_v51, %v575_v57  ;;  %v634_v19 = vmul.f32 %v2049_v2, %v575_v57  ;;  %v643_v13 = vmul.f32 %v2039_v14, %v575_v57  ;;  %v606_v21 = vmul.f32 %v2024_v55, %v575_v57 }
 0x174   : > { %v856_v59 = vadd.f32 %v852_v46, %v819_v60  ;;  %v689_v16 = vadd.f32 %v685_v53, %v662_v38  ;;  %v659_v2 = vsel %vm656_vm2, 0.0, %v650_v37 }
 0x175   : > { %v638_v61 = vadd.f32 %v634_v19, %v629_v62  ;;  %v651_v25 = vrot.slane %v643_v13, 7  ;;  %v624_v41 = vadd.f32 %v620_v33, %v615_v9  ;;  %v610_v44 = vadd.f32 %v606_v21, %v601_v24 }
 0x176   : > { %v892_v42 = vadd.f32 %v888_v6, %v856_v59  ;;  %1192 = vmatmul.msk.f32.gmra.mxu1 %vm387_vm1, %v689_v16  ;;  %v663_v17 = vadd.f32 %v659_v2, %v637_v43 }
 0x177   : > { %v660_v51 = vsel %vm656_vm2, 0.0, %v651_v25  ;;  %v674_v14 = vrot.slane %v624_v41, 7  ;;  %1187 = vmatmul.msk.f32.gmra.mxu0 %vm387_vm1, %v2070_v18  ;;  %v853_v18 = vsel %vm656_vm2, 0.0, %v844_v26 }
 0x178   : > { %v664_v29 = vadd.f32 %v660_v51, %v638_v61  ;;  %v846_v55 = vpop.permute.xlu0 %845  ;;  %v857_v5 = vadd.f32 %v853_v18, %v820_v56 }
 0x179   : > { %v854_v45 = vsel %vm656_vm2, 0.0, %v846_v55  ;;  %v757_v0 = vpop.permute.xlu1 %756  ;;  %v682_v3 = vsel %vm656_vm2, 0.0, %v674_v14 }
 0x17a   : > { %666 = vst.msk [vmem:[#allocation2] sm:$0xff] %vm387_vm1, %v664_v29  ;;  %v858_v49 = vadd.f32 %v854_v45, %v821_v22  ;;  %v686_v36 = vadd.f32 %v682_v3, %v610_v44  ;;  %v765_v11 = vadd.f32 %v757_v0, %v2095_v35 }
 0x17c   : > { %861 = vst.msk [vmem:[#allocation2 + $0x8] sm:$0xff] %vm387_vm1, %v858_v49  ;;  %v690_v50 = vadd.f32 %v686_v36, %v663_v17 }
 0x17e   : > { %1193 = vmatmul.msk.f32.gmra.mxu1 %vm387_vm1, %v690_v50 }
 0x17f   : > { %1188 = vmatmul.msk.f32.gmra.mxu0 %vm387_vm1, %v892_v42 }
 0x181   : > { %v877_v47 = vpop.permute.xlu1 %876 }
 0x182   : > { %v885_v58 = vsel %vm656_vm2, 0.0, %v877_v47 }
 0x183   : > { %v889_v32 = vadd.f32 %v885_v58, %v765_v11 }
 0x185   : > { %v893_v10 = vadd.f32 %v889_v32, %v857_v5 }
 0x187   : > { %1189 = vmatmul.msk.f32.gmra.mxu0 %vm387_vm1, %v893_v10 }
 0x1e3   : > { %v966_v54 = vpop.f32.mrf.mxu1 }
 0x1eb   : > { %v969_v31 = vpop.f32.mrf.mxu1 }
 0x1ec   : > { %v925_v63 = vpop.f32.mrf.mxu0 }
 0x1ed   : > { %v967_v15 = vadd.f32 %v966_v54, %v925_v63 }
 0x1ef   : > { %v978_v8 = vmax.f32 %v967_v15, 0.0 }
 0x1f1   : > { %983 = vst.msk [vmem:[%s1842_s5] sm:$0xff] %vm982_vm3, %v978_v8 }
 0x1f3   : > { %v972_v20 = vpop.f32.mrf.mxu1 }
 0x1f4   : > { %v928_v35 = vpop.f32.mrf.mxu0 }
 0x1f5   : > { %v970_v12 = vadd.f32 %v969_v31, %v928_v35 }
 0x1f7   : > { %v979_v62 = vmax.f32 %v970_v12, 0.0 }
 0x1f9   : > { %984 = vst.msk [vmem:[%s1842_s5 + $0x8] sm:$0xff] %vm982_vm3, %v979_v62 }
 0x1fb   : > { %v975_v9 = vpop.f32.mrf.mxu1 }
 0x1fc   : > { %v931_v39 = vpop.f32.mrf.mxu0 }
 0x1fd   : > { %v973_v23 = vadd.f32 %v972_v20, %v931_v39 }
 0x1ff   : > { %v980_v1 = vmax.f32 %v973_v23, 0.0 }
 0x201   : > { %985 = vst.msk [vmem:[%s1842_s5 + $0x10] sm:$0xff] %vm982_vm3, %v980_v1 }
 0x204   : > { %v934_v7 = vpop.f32.mrf.mxu0 }
 0x205   : > { %v976_v48 = vadd.f32 %v975_v9, %v934_v7 }
 0x207   : > { %v981_v26 = vmax.f32 %v976_v48, 0.0 }
 0x209   : > { %986 = vst.msk [vmem:[%s1842_s5 + $0x18] sm:$0xff] %vm982_vm3, %v981_v26 }
 0x20a   : > { %1547 = shalt.err (!%p1544_p13)
}
 0x20b   : > { %s1644_s1 = smov 128  }
 0x20c   : > { %1225 = dma.vmem_to_hbm [thread:$0]  (%p1794_p2), %s1003_s15, 512, %s1005_s24, %s988_s25, %s1644_s1, %s1644_s1, %s1643_s30  }
 0x20d PF: > { %s2226_s3 = sld [smem:[#allocation20_spill]]  ;;  %p1262_p0 = scmp.ge.s32.totalorder %s1630_s28, 2 }
 0x20f   : > { %p1248_p5 = pnand %p1262_p0, %p1800_p4 }
 0x211   : > { %p1249_p6 = pneg %p1248_p5 }
 0x213   : > { %s1019_s21 = sand.u32 1, %s2226_s3  }
 0x214   : > { %s1020_s10 = scalar_lea.sflag [#allocation5], %s1019_s21 }
 0x215   : > { %1597 = dma.done.wait (%p1249_p6), %s1020_s10, 512  }
 0x216   : > { %1599 = vsyncadd (%p1249_p6), %s1020_s10, 4294966784  ;;  %s25_s28 = sadd.s32 1, %s1630_s28   ;;  %s2228_s16 = sld [smem:[#allocation21_spill]] }
 0x217   : > { %p22_p7 = scmp.ge.s32.totalorder %s25_s28, 6   ;;  %s2229_s30 = sld [smem:[#allocation22_spill]] }
 0x218   : > { %s2230_s21 = smov %s1606_s22  ;;  %s2231_s22 = smov %s1610_s23 }
 0x219   : > { %s2232_s23 = smov %s1807_s7  ;;  %s2233_s24 = smov %s1622_s26 }
 0x21a   : > { %s2234_s25 = smov %s1626_s27  ;;  %24 = sbr.rel (!%p22_p7) target bundleno = 16 (0x10), region = 115 }
 0x21c   : > { %s2235_s26 = smov %s2228_s16 }
 0x21d   : > { %s2236_s27 = smov %s2229_s30 }
 0x21f   :  { %1026 = vsyncpa [#allocation4], 1 }
 0x220   :  { %1028 = vsyncpa [#allocation4 + $0x1], 1 }
 0x221   :  { %1029 = vsyncpa [#allocation7], 1 }
 0x222   :  { %1030 = vsyncpa [#allocation10], 1 }
 0x223   :  { %1031 = vsyncpa [#allocation13], 1 }
 0x224   :  { %1032 = vsyncpa [#allocation5], 1 }
 0x225   :  { %1034 = vsyncpa [#allocation5 + $0x1], 1 }

</bundles_post_ra>
